<compile_context>
chip_gen: v6e
topology: v6e:2x2x1
jax: 0.10.0
libtpu: 0.0.40
codegen_flags: <defaults>
</compile_context>

<pallas_src>
import functools

import jax
import jax.numpy as jnp
import numpy as np
from jax.experimental import pallas as pl
from jax.experimental.pallas import tpu as pltpu


_LANES = 128
_MAX_LANE_WIDTH = 32 * 1024          # widest lane-dense slab width we use
_MAX_DMAS_IN_FLIGHT = 4
_MIN_CHUNK_BYTES = 2 * 1024 * 1024   # don't bother splitting tiny copies


def _resolve_shape(total, shape):
    shape = list(shape)
    if -1 in shape:
        idx = shape.index(-1)
        known = 1
        for i, s in enumerate(shape):
            if i != idx:
                known *= int(s)
        assert known > 0 and total % known == 0, "view shape incompatible with input size"
        shape[idx] = total // known
    assert int(np.prod(shape)) == total, "view shape incompatible with input size"
    return tuple(int(s) for s in shape)


def _sublanes_for_dtype(dtype):
    itemsize = jnp.dtype(dtype).itemsize
    return {1: 32, 2: 16, 4: 8}.get(itemsize, 8)


def _chunk_rows(rows, n_chunks, sub):
    """Static (start, size) row chunks; all but the last aligned to `sub`."""
    n_chunks = max(1, min(n_chunks, rows))
    base = -(-rows // n_chunks)                    # ceil div
    if base % sub and base < rows:
        base = ((base + sub - 1) // sub) * sub     # keep interior chunks aligned
    chunks = []
    start = 0
    while start < rows:
        size = min(base, rows - start)
        chunks.append((start, size))
        start += size
    return tuple(chunks)


def _dma_copy_kernel(x_hbm, o_hbm, sem, *, chunks):
    # Direct HBM->HBM DMA copy: no VMEM staging, no vreg traffic.
    copies = []
    for i, (start, size) in enumerate(chunks):
        cp = pltpu.make_async_copy(
            x_hbm.at[pl.ds(start, size), :],
            o_hbm.at[pl.ds(start, size), :],
            sem.at[i],
        )
        cp.start()
        copies.append(cp)
    for cp in copies:
        cp.wait()


def _pallas_copy_hbm(slab):
    rows, width = slab.shape
    itemsize = jnp.dtype(slab.dtype).itemsize
    total_bytes = rows * width * itemsize
    sub = _sublanes_for_dtype(slab.dtype)

    desired = max(1, min(_MAX_DMAS_IN_FLIGHT, total_bytes // _MIN_CHUNK_BYTES))
    chunks = _chunk_rows(rows, desired, sub)

    kernel = functools.partial(_dma_copy_kernel, chunks=chunks)
    return pl.pallas_call(
        kernel,
        out_shape=jax.ShapeDtypeStruct((rows, width), slab.dtype),
        in_specs=[pl.BlockSpec(memory_space=pl.ANY)],
        out_specs=pl.BlockSpec(memory_space=pl.ANY),
        scratch_shapes=[pltpu.SemaphoreType.DMA((len(chunks),))],
        cost_estimate=pl.CostEstimate(
            flops=0, transcendentals=0, bytes_accessed=2 * total_bytes),
        compiler_params=pltpu.CompilerParams(has_side_effects=True),
    )(slab)


def pallas_view(x, shape, *, force_data_pass=False):
    """torch.Tensor.view(*shape) equivalent.

    A contiguous view is metadata-only, so by default this is a free
    jnp.reshape (zero HBM traffic).  With force_data_pass=True the bytes are
    pushed through one Pallas HBM->HBM DMA pass.
    """
    total = int(x.size)
    out_shape = _resolve_shape(total, shape)

    if not force_data_pass or total == 0:
        return jnp.reshape(x, out_shape)

    if total % _LANES != 0:
        # TODO(synk): non-128-divisible element counts use the metadata-only
        # reshape; a bulk-aligned slab plus a small masked tail DMA would be
        # needed to force a data pass for such sizes.
        return jnp.reshape(x, out_shape)

    # Lane-dense slab: widest power-of-two multiple of 128 dividing total.
    width = _LANES
    while total % (width * 2) == 0 and width * 2 <= _MAX_LANE_WIDTH:
        width *= 2
    rows = total // width

    flat = jnp.reshape(x, (total,))           # metadata-only bitcast
    slab = jnp.reshape(flat, (rows, width))   # metadata-only bitcast
    out_slab = _pallas_copy_hbm(slab)
    return jnp.reshape(out_slab, out_shape)


class View:
    """JAX/Pallas equivalent of the PyTorch View module."""

    def __init__(self, shape):
        self.shape = shape

    def __call__(self, x, *, force_data_pass=False):
        return pallas_view(x, self.shape, force_data_pass=force_data_pass)


if __name__ == "__main__":
    key = jax.random.PRNGKey(0)
    x = jax.random.normal(key, (2, 4, 16, 16), dtype=jnp.float32)

    ref = jnp.reshape(x, (2, -1))

    # Default module path: metadata-only view (the fastest copy is no copy).
    view = View((2, -1))
    out = jax.block_until_ready(view(x))
    assert out.shape == (2, 1024), out.shape
    assert out.dtype == x.dtype
    np.testing.assert_array_equal(np.asarray(out), np.asarray(ref))

    # Forced data pass: exercises the Pallas HBM->HBM DMA kernel once.
    out_dma = jax.block_until_ready(view(x, force_data_pass=True))
    assert out_dma.shape == (2, 1024), out_dma.shape
    assert out_dma.dtype == x.dtype
    np.testing.assert_array_equal(np.asarray(out_dma), np.asarray(ref))

    print("KERNEL_OK")
</pallas_src>

<mosaic_0001>
module attributes {stable_mosaic.version = 11 : i64} {
  func.func @_dma_copy_kernel(%arg0: memref<1x2048xf32, #tpu.memory_space<any>>, %arg1: memref<1x2048xf32, #tpu.memory_space<any>>, %arg2: memref<1x!tpu.dma_semaphore, #tpu.memory_space<semaphore_mem>>) attributes {dimension_semantics = [], scalar_prefetch = 0 : i64, scratch_operands = 1 : i64, tpu.core_type = #tpu.core_type<tc>} {
    %c0_i32 = arith.constant 0 : i32
    %c0_i32_0 = arith.constant 0 : i32
    %c0_i32_1 = arith.constant 0 : i32
    %0 = tpu.memref_slice %arg0[%c0_i32_0, %c0_i32_1] : memref<1x2048xf32, #tpu.memory_space<any>> -> memref<1x2048xf32, #tpu.memory_space<any>>
    %c0_i32_2 = arith.constant 0 : i32
    %c0_i32_3 = arith.constant 0 : i32
    %1 = tpu.memref_slice %arg1[%c0_i32_2, %c0_i32_3] : memref<1x2048xf32, #tpu.memory_space<any>> -> memref<1x2048xf32, #tpu.memory_space<any>>
    %2 = tpu.memref_slice %arg2[%c0_i32] : memref<1x!tpu.dma_semaphore, #tpu.memory_space<semaphore_mem>> -> memref<1x!tpu.dma_semaphore, #tpu.memory_space<semaphore_mem>>
    %3 = tpu.memref_squeeze %2 : memref<1x!tpu.dma_semaphore, #tpu.memory_space<semaphore_mem>> -> memref<!tpu.dma_semaphore, #tpu.memory_space<semaphore_mem>>
    tpu.enqueue_dma source(%0 : memref<1x2048xf32, #tpu.memory_space<any>>) target(%1 : memref<1x2048xf32, #tpu.memory_space<any>>) target_semaphore(%3 : memref<!tpu.dma_semaphore, #tpu.memory_space<semaphore_mem>>)
    %c0_i32_4 = arith.constant 0 : i32
    %c0_i32_5 = arith.constant 0 : i32
    %c0_i32_6 = arith.constant 0 : i32
    %4 = tpu.memref_slice %arg0[%c0_i32_5, %c0_i32_6] : memref<1x2048xf32, #tpu.memory_space<any>> -> memref<1x2048xf32, #tpu.memory_space<any>>
    %c0_i32_7 = arith.constant 0 : i32
    %c0_i32_8 = arith.constant 0 : i32
    %5 = tpu.memref_slice %arg1[%c0_i32_7, %c0_i32_8] : memref<1x2048xf32, #tpu.memory_space<any>> -> memref<1x2048xf32, #tpu.memory_space<any>>
    %6 = tpu.memref_slice %arg2[%c0_i32_4] : memref<1x!tpu.dma_semaphore, #tpu.memory_space<semaphore_mem>> -> memref<1x!tpu.dma_semaphore, #tpu.memory_space<semaphore_mem>>
    %7 = tpu.memref_squeeze %6 : memref<1x!tpu.dma_semaphore, #tpu.memory_space<semaphore_mem>> -> memref<!tpu.dma_semaphore, #tpu.memory_space<semaphore_mem>>
    tpu.wait_dma2 semaphore(%7 : memref<!tpu.dma_semaphore, #tpu.memory_space<semaphore_mem>>) src(%4 : memref<1x2048xf32, #tpu.memory_space<any>>) dst(%5 : memref<1x2048xf32, #tpu.memory_space<any>>)
    return
  }
}

</mosaic_0001>

<bundles_post_ra>
// kernel: tpu_custom_call.1
= control target key start
LH: loop header
LB: loop body
LE: loop exit
PB: predicated region body
PF: predicated region fallthrough
CT: control target
= control target key end

     0   :  { %s28_s6 = smov [#allocation2]   ;;  %s29_s7 = smov 131072   ;;  %s47_s0 = inlined_call_operand.hbm [shape: f32[1,2048], index: 0, kind: input, shape index: {}]   ;;  %s48_s1 = inlined_call_operand.hbm [shape: f32[1,2048], index: 1, kind: output, shape index: {}]  }
   0x1   :  { %s30_s8 = smov 0  }
   0x2   :  { %12 = dma.general %s47_s0, 256, %s48_s1, %s28_s6, %s29_s7, [#allocation4], %s30_s8, 0  }
   0x3   :  { %26 = dma.done.wait [#allocation2], 256 }
   0x4   :  { %27 = vsyncadd [#allocation2], 4294967040 }
   0x5   :  { %16 = vsyncmov [#allocation2] }
   0x8   :  { %s17_s13 = vpop.sfrf %16 }
   0x9   :  { %p22_p0 = scmp.ne.s32.totalorder %s17_s13, 0 }
   0xb   :  { %21 = shalt.err (%p22_p0)  }

</bundles_post_ra>
